<compile_context>
chip_gen: v7x
topology: tpu7x:2x2x1
jax: 0.10.0
libtpu: 0.0.40
codegen_flags: <defaults>
</compile_context>

<pallas_src>
import jax
import jax.numpy as jnp
from jax.experimental import pallas as pl
from jax.experimental.pallas import tpu as pltpu

TIMESTEPS = 1000
_LANE = 128
# Per-operand byte threshold above which we switch from a single gridless
# invocation to a 1-D grid over the batch axis.
_GRID_BYTES_THRESHOLD = 2 << 20


def linear_beta_schedule(timesteps):
    # NOTE: the reference reassigns beta_start/end, so the effective schedule
    # is linspace(1e-5, 1e-4, timesteps).
    beta_start = 1e-05
    beta_end = 0.0001
    return jnp.linspace(beta_start, beta_end, timesteps, dtype=jnp.float32)


def make_diffusion_buffers(timesteps=TIMESTEPS):
    betas = linear_beta_schedule(timesteps)
    alphas = 1.0 - betas
    alphas_cumprod = jnp.cumprod(alphas)
    return {
        "alphas_cumprod": alphas_cumprod,
        "sqrt_alphas_cumprod": jnp.sqrt(alphas_cumprod),
        "sqrt_one_minus_alphas_cumprod": jnp.sqrt(1.0 - alphas_cumprod),
        "log_one_minus_alphas_cumprod": jnp.log(1.0 - alphas_cumprod),
    }


def _q_sample_scale_kernel(x_ref, n_ref, a_ref, b_ref, s_ref, out_ref):
    """out = s * (a * x + b * n), proposals on the lane axis.

    x, n, out : (bb, 4, P_pad)  normalized boxes / noise
    a, b      : (bb, 1, P_pad)  per-(image, proposal) schedule coeffs (sublane bcast)
    s         : (bb, 4, 1)      per-image [w, h, w, h] scale (lane bcast)
    """
    out_ref[...] = s_ref[...] * (a_ref[...] * x_ref[...] + b_ref[...] * n_ref[...])


@jax.jit
def q_sample_and_scale_batched(t, sqrt_ac, sqrt_omac, boxes, noise, scales):
    """prior[b,i,:] = scales[b,:] * ( sqrt_ac[t[b,i]] * boxes[b,i,:]/scales[b,:]
                                      + sqrt_omac[t[b,i]] * noise[b,i,:] )

    t:      (B, P) int32 diffusion timesteps (< TIMESTEPS)
    boxes:  (B, P, 4) f32 sampled gt boxes in pixel coords
    noise:  (B, P, 4) f32 gaussian noise
    scales: (B, 4)    f32 per-image [w, h, w, h]
    """
    B, P, C = boxes.shape
    P_pad = ((P + _LANE - 1) // _LANE) * _LANE
    pad = P_pad - P

    t = t.astype(jnp.int32)
    if pad:
        t = jnp.pad(t, ((0, 0), (0, pad)))  # pad the index array once
    # "extract": gather the schedule coefficients once (compact (B, P_pad));
    # broadcast to the element shape happens inside the kernel.
    a = jnp.take(sqrt_ac.astype(jnp.float32), t, axis=0)[:, None, :]    # (B,1,P_pad)
    b = jnp.take(sqrt_omac.astype(jnp.float32), t, axis=0)[:, None, :]  # (B,1,P_pad)

    scales = scales.astype(jnp.float32)
    # (B, P, 4) -> (B, 4, P_pad): box coords on sublanes, proposals on lanes.
    x = jnp.transpose(boxes.astype(jnp.float32) / scales[:, None, :], (0, 2, 1))
    n = jnp.transpose(noise.astype(jnp.float32), (0, 2, 1))
    if pad:
        x = jnp.pad(x, ((0, 0), (0, 0), (0, pad)))
        n = jnp.pad(n, ((0, 0), (0, 0), (0, pad)))
    s = scales[:, :, None]                                               # (B,4,1)

    out_shape = jax.ShapeDtypeStruct((B, C, P_pad), jnp.float32)
    operand_bytes = B * C * P_pad * 4

    if operand_bytes <= _GRID_BYTES_THRESHOLD:
        # Tiny payload: one gridless invocation, all operands full-array VMEM.
        out = pl.pallas_call(
            _q_sample_scale_kernel,
            out_shape=out_shape,
            in_specs=[pl.BlockSpec(memory_space=pltpu.MemorySpace.VMEM)] * 5,
            out_specs=pl.BlockSpec(memory_space=pltpu.MemorySpace.VMEM),
            input_output_aliases={0: 0},  # reuse the boxes HBM buffer for the output
        )(x, n, a, b, s)
    else:
        # Large payload: parallel 1-D grid over images -- shards across both
        # v7x TensorCores and keeps per-step VMEM bounded on v6e/v5e.
        out = pl.pallas_call(
            _q_sample_scale_kernel,
            out_shape=out_shape,
            grid=(B,),
            in_specs=[
                pl.BlockSpec((1, C, P_pad), lambda i: (i, 0, 0)),
                pl.BlockSpec((1, C, P_pad), lambda i: (i, 0, 0)),
                pl.BlockSpec((1, 1, P_pad), lambda i: (i, 0, 0)),
                pl.BlockSpec((1, 1, P_pad), lambda i: (i, 0, 0)),
                pl.BlockSpec((1, C, 1), lambda i: (i, 0, 0)),
            ],
            out_specs=pl.BlockSpec((1, C, P_pad), lambda i: (i, 0, 0)),
            compiler_params=pltpu.CompilerParams(dimension_semantics=("parallel",)),
            input_output_aliases={0: 0},
        )(x, n, a, b, s)

    # Single un-pad + transpose back to the module's (B, P, 4) convention.
    return jnp.transpose(out[:, :, :P], (0, 2, 1))


class DiffusionGroundTruth:
    def __init__(self, gaussian_error: float = 0.1, is_inf_proposal: bool = False):
        self.gaussian_error = gaussian_error
        self.is_inf_proposal = is_inf_proposal
        self.timesteps = TIMESTEPS
        bufs = make_diffusion_buffers(self.timesteps)
        self.sqrt_alphas_cumprod = bufs["sqrt_alphas_cumprod"]
        self.alphas_cumprod = bufs["alphas_cumprod"]
        self.sqrt_one_minus_alphas_cumprod = bufs["sqrt_one_minus_alphas_cumprod"]
        self.log_one_minus_alphas_cumprod = bufs["log_one_minus_alphas_cumprod"]

    def forward(self, num_proposal_boxes: int, batched_inputs, key):
        outs = []
        pending = []  # (output slot, sampled gt boxes [px], t, noise, scale_row)
        for bi in batched_inputs:
            key, k_idx, k_t, k_noise = jax.random.split(key, 4)
            bi = dict(bi)
            gt_boxes = bi["gt_boxes"]                          # (N, 4) float32
            h, w = bi["image"].shape[-2:]
            scale_row = jnp.array([w, h, w, h], dtype=jnp.float32)

            if gt_boxes.shape[0] > 0:
                sampled_indices = jax.random.randint(
                    k_idx, (num_proposal_boxes,), 0, gt_boxes.shape[0], dtype=jnp.int32)
                bi["original_gt"] = sampled_indices
                # pixel-coord boxes; normalization happens inside the batched jit
                sampled_gt_boxes = gt_boxes[sampled_indices]
                t = jax.random.randint(
                    k_t, (num_proposal_boxes,), 0, self.timesteps, dtype=jnp.int32)
                noise = jax.random.normal(
                    k_noise, (num_proposal_boxes, 4), dtype=jnp.float32)
                pending.append((len(outs), sampled_gt_boxes, t, noise, scale_row))
                bi["prior_t"] = t
                bi["proposal_boxes"] = None   # filled by the batched kernel call below
            else:
                # TODO(synk): faithful to the reference, which applies `scale` twice
                # here and sets prior_t = 1000 (== timesteps, out of schedule range).
                bi["prior_t"] = jnp.full((num_proposal_boxes,), 1000, dtype=jnp.int32)
                corrupted = scale_row[None, :] * jax.random.normal(
                    k_noise, (num_proposal_boxes, 4), dtype=jnp.float32)
                bi["proposal_boxes"] = scale_row[None, :] * corrupted
            outs.append(bi)

        # One batched pallas_call for every image with ground truth (amortizes
        # launch / DMA overhead across the whole batch).
        if pending:
            boxes = jnp.stack([p[1] for p in pending])     # (B', P, 4)
            ts = jnp.stack([p[2] for p in pending])        # (B', P)
            noises = jnp.stack([p[3] for p in pending])    # (B', P, 4)
            scales = jnp.stack([p[4] for p in pending])    # (B', 4)
            priors = q_sample_and_scale_batched(
                ts, self.sqrt_alphas_cumprod, self.sqrt_one_minus_alphas_cumprod,
                boxes, noises, scales)
            for slot, p in enumerate(pending):
                outs[p[0]]["proposal_boxes"] = priors[slot]
        return outs


def _q_sample_reference(t, sqrt_ac, sqrt_omac, boxes_norm, noise, scale_row):
    a = sqrt_ac[t][:, None]
    b = sqrt_omac[t][:, None]
    return scale_row[None, :] * (a * boxes_norm + b * noise)


if __name__ == "__main__":
    key = jax.random.PRNGKey(0)
    num_proposal_boxes = 8
    batch = 2

    batched_inputs = []
    for i in range(batch):
        key, k_img, k_box = jax.random.split(key, 3)
        image = jax.random.normal(k_img, (3, 16, 16), dtype=jnp.float32)   # CHW per-image tensor
        # 5 ground-truth boxes in pixel coords within the 16x16 image.
        xy = jax.random.uniform(k_box, (5, 2), minval=0.0, maxval=8.0)
        wh = jax.random.uniform(jax.random.fold_in(k_box, 1), (5, 2), minval=1.0, maxval=8.0)
        gt_boxes = jnp.concatenate([xy, xy + wh], axis=-1).astype(jnp.float32)
        batched_inputs.append({"image": image, "gt_boxes": gt_boxes})

    model = DiffusionGroundTruth(gaussian_error=0.1, is_inf_proposal=False)
    outputs = model.forward(num_proposal_boxes, batched_inputs, jax.random.PRNGKey(0))

    for bi in outputs:
        jax.block_until_ready(bi["proposal_boxes"])
        jax.block_until_ready(bi["prior_t"])

    # Sanity check: replay the RNG chain and compare every image's proposal
    # boxes against a pure-JAX reference of q_sample + scale.
    key_chk = jax.random.PRNGKey(0)
    for i in range(batch):
        key_chk, k_idx, k_t, k_noise = jax.random.split(key_chk, 4)
        gt = batched_inputs[i]["gt_boxes"]
        h, w = batched_inputs[i]["image"].shape[-2:]
        scale_row = jnp.array([w, h, w, h], dtype=jnp.float32)
        idx = jax.random.randint(k_idx, (num_proposal_boxes,), 0, gt.shape[0], dtype=jnp.int32)
        boxes_norm = gt[idx] / scale_row[None, :]
        t = jax.random.randint(k_t, (num_proposal_boxes,), 0, TIMESTEPS, dtype=jnp.int32)
        noise = jax.random.normal(k_noise, (num_proposal_boxes, 4), dtype=jnp.float32)
        ref = _q_sample_reference(t, model.sqrt_alphas_cumprod,
                                  model.sqrt_one_minus_alphas_cumprod,
                                  boxes_norm, noise, scale_row)
        assert jnp.allclose(outputs[i]["proposal_boxes"], ref, rtol=1e-5, atol=1e-5), i
        assert jnp.array_equal(outputs[i]["prior_t"], t), i

    print("KERNEL_OK")
</pallas_src>

<mosaic_0001>
module attributes {stable_mosaic.version = 11 : i64} {
  func.func @_q_sample_scale_kernel(%arg0: memref<2x4x128xf32, #tpu.memory_space<vmem>>, %arg1: memref<2x4x128xf32, #tpu.memory_space<vmem>>, %arg2: memref<2x1x128xf32, #tpu.memory_space<vmem>>, %arg3: memref<2x1x128xf32, #tpu.memory_space<vmem>>, %arg4: memref<2x4x1xf32, #tpu.memory_space<vmem>>, %arg5: memref<2x4x128xf32, #tpu.memory_space<vmem>>) attributes {dimension_semantics = [], scalar_prefetch = 0 : i64, scratch_operands = 0 : i64, tpu.core_type = #tpu.core_type<tc>} {
    %c0 = arith.constant 0 : index
    %c0_0 = arith.constant 0 : index
    %c0_1 = arith.constant 0 : index
    %0 = vector.load %arg4[%c0, %c0_0, %c0_1] : memref<2x4x1xf32, #tpu.memory_space<vmem>>, vector<2x4x1xf32>
    %c0_2 = arith.constant 0 : index
    %c0_3 = arith.constant 0 : index
    %c0_4 = arith.constant 0 : index
    %1 = vector.load %arg2[%c0_2, %c0_3, %c0_4] : memref<2x1x128xf32, #tpu.memory_space<vmem>>, vector<2x1x128xf32>
    %c0_5 = arith.constant 0 : index
    %c0_6 = arith.constant 0 : index
    %c0_7 = arith.constant 0 : index
    %2 = vector.load %arg0[%c0_5, %c0_6, %c0_7] : memref<2x4x128xf32, #tpu.memory_space<vmem>>, vector<2x4x128xf32>
    %3 = vector.broadcast %1 : vector<2x1x128xf32> to vector<2x4x128xf32>
    %4 = arith.mulf %3, %2 : vector<2x4x128xf32>
    %c0_8 = arith.constant 0 : index
    %c0_9 = arith.constant 0 : index
    %c0_10 = arith.constant 0 : index
    %5 = vector.load %arg3[%c0_8, %c0_9, %c0_10] : memref<2x1x128xf32, #tpu.memory_space<vmem>>, vector<2x1x128xf32>
    %c0_11 = arith.constant 0 : index
    %c0_12 = arith.constant 0 : index
    %c0_13 = arith.constant 0 : index
    %6 = vector.load %arg1[%c0_11, %c0_12, %c0_13] : memref<2x4x128xf32, #tpu.memory_space<vmem>>, vector<2x4x128xf32>
    %7 = vector.broadcast %5 : vector<2x1x128xf32> to vector<2x4x128xf32>
    %8 = arith.mulf %7, %6 : vector<2x4x128xf32>
    %9 = arith.addf %4, %8 : vector<2x4x128xf32>
    %10 = vector.broadcast %0 : vector<2x4x1xf32> to vector<2x4x128xf32>
    %11 = arith.mulf %10, %9 : vector<2x4x128xf32>
    %c0_14 = arith.constant 0 : index
    %c0_15 = arith.constant 0 : index
    %c0_16 = arith.constant 0 : index
    %12 = vector.load %arg5[%c0_14, %c0_15, %c0_16] : memref<2x4x128xf32, #tpu.memory_space<vmem>>, vector<2x4x128xf32>
    tpu.vector_store %arg5[%c0_14, %c0_15, %c0_16], %11 {strides = array<i32>} : memref<2x4x128xf32, #tpu.memory_space<vmem>>, vector<2x4x128xf32>,
    return
  }
}

</mosaic_0001>

<bundles_post_ra>
// kernel: q_sample_and_scale_batched.1
= control target key start
LH: loop header
LB: loop body
LE: loop exit
PB: predicated region body
PF: predicated region fallthrough
CT: control target
= control target key end

     0   :  { %v84_v0 = vmov 0   ;;  %s151_s4 = inlined_call_operand.vmem [shape: f32[2,4,1], index: 4, kind: input, shape index: {}]   ;;  %s152_s2 = inlined_call_operand.vmem [shape: f32[2,1,128], index: 2, kind: input, shape index: {}]   ;;  %s153_s0 = inlined_call_operand.vmem [shape: f32[2,4,128], index: 0, kind: input, shape index: {}, may-alias: {0,5}]   ;;  %s154_s1 = inlined_call_operand.vmem [shape: f32[2,4,128], index: 1, kind: input, shape index: {}]   ;;  %s155_s3 = inlined_call_operand.vmem [shape: f32[2,1,128], index: 3, kind: input, shape index: {}]   ;;  %s156_s5 = inlined_call_operand.vmem [shape: f32[2,4,128], index: 5, kind: output, shape index: {}, may-alias: {0,5}]  }
   0x1   :  { %83 = vset.pattern.permute.xlu0 %v84_v0  ;;  %v20_v1 = vld [vmem:[%s151_s4] sm:$0xf]  ;;  %v21_v2 = vld [vmem:[%s151_s4 + $0x4] sm:$0xf] }
   0x2   :  { %62 = vperm.xlu0 %83, %v20_v1   ;;  %v78_v3 = vld [vmem:[%s152_s2] ss:$0 sm:$0xff]  ;;  %v79_v9 = vld [vmem:[%s152_s2 + $0x1] ss:$0 sm:$0xff]  ;;  %v25_v10 = vld [vmem:[%s153_s0 + $0x4] sm:$0xf] }
   0x3   :  { %v24_v4 = vld [vmem:[%s153_s0] sm:$0xf]  ;;  %v43_v12 = vld [vmem:[%s154_s1 + $0x4] sm:$0xf]  ;;  %v39_v14 = vmul.f32 %v79_v9, %v25_v10 }
   0x4   :  { %v80_v5 = vld [vmem:[%s155_s3] ss:$0 sm:$0xff]  ;;  %v38_v7 = vmul.f32 %v78_v3, %v24_v4  ;;  %v81_v11 = vld [vmem:[%s155_s3 + $0x1] ss:$0 sm:$0xff] }
   0x5   :  { %v42_v6 = vld [vmem:[%s154_s1] sm:$0xf]  ;;  %v57_v15 = vmul.f32 %v81_v11, %v43_v12 }
   0x6   :  { %67 = vperm.xlu0 %83, %v21_v2   ;;  %v56_v8 = vmul.f32 %v80_v5, %v42_v6 }
   0x7   :  { %v59_v18 = vadd.f32 %v57_v15, %v39_v14 }
   0x8   :  { %v58_v13 = vadd.f32 %v56_v8, %v38_v7 }
  0x81   :  { %v63_v16 = vpop.permute.xlu0 %62 }
  0x82   :  { %v70_v17 = vmul.f32 %v63_v16, %v58_v13 }
  0x84   :  { %72 = vst [vmem:[%s156_s5] sm:$0xf] %v70_v17 }
  0x85   :  { %v68_v19 = vpop.permute.xlu0 %67 }
  0x86   :  { %v71_v20 = vmul.f32 %v68_v19, %v59_v18 }
  0x88   :  { %73 = vst [vmem:[%s156_s5 + $0x4] sm:$0xf] %v71_v20 }

</bundles_post_ra>
